<compile_context>
chip_gen: v7x
topology: tpu7x:2x2x1
jax: 0.10.0
libtpu: 0.0.40
codegen_flags: <defaults>
</compile_context>

<pallas_src>
import functools
import math

import jax
import jax.numpy as jnp
from jax import lax
from jax.experimental import pallas as pl
from jax.experimental.pallas import tpu as pltpu


def _round_up(x, m):
    return (x + m - 1) // m * m


def _pick_lane_tile(l_out, c_r, c_out, halo):
    """Lane-tile width: multiple of 128, capped at 512, VMEM-budget aware."""
    t_l = 512 if l_out > 512 else max(128, _round_up(l_out, 128))

    def est(t):  # double-buffered bf16 activation block + f32 output block
        return 2 * c_r * (t + halo) * 2 + 2 * c_out * t * 4

    while t_l > 128 and est(t_l) > 10 * 1024 * 1024:   # v5e-safe budget
        t_l = max(128, ((t_l // 2) // 128) * 128)
    return t_l


def _conv_taps_kernel(x_ref, w_ref, b_ref, o_ref, *, n_taps, shift, t_l, n_b):
    # x_ref: [n_b, C_r, win] (bf16)   w_ref: [n_taps, C_out, C_r] (bf16)
    # b_ref: [C_out, 1] (f32)         o_ref: [n_b, C_out, t_l]
    bias = b_ref[...]
    for i in range(n_b):                               # static unroll over packed rows
        x = x_ref[i]                                   # [C_r, win]
        acc = jnp.dot(w_ref[0], x[:, 0:t_l],
                      preferred_element_type=jnp.float32)       # MXU, f32 accumulate
        for k in range(1, n_taps):                     # static unroll over taps
            s = k * shift
            acc = acc + jnp.dot(w_ref[k], x[:, s:s + t_l],
                                preferred_element_type=jnp.float32)
        o_ref[i] = (acc + bias).astype(o_ref.dtype)


def conv_norm_forward(signal, weight, bias=None, *, stride=1, padding=None,
                      dilation=1):
    """ConvNorm.forward: 1-D convolution, NCL layout, optional bias."""
    B, C_in, L = signal.shape
    C_out, C_in_w, K = weight.shape
    assert C_in_w == C_in, "weight / signal channel mismatch"
    if padding is None:
        assert K % 2 == 1, "ConvNorm default padding requires odd kernel_size"
        padding = int(dilation * (K - 1) / 2)
    L_out = (L + 2 * padding - dilation * (K - 1) - 1) // stride + 1
    assert L_out >= 1, "output length must be positive"

    act_dt = jnp.bfloat16
    out_dt = signal.dtype
    if bias is None:
        bias = jnp.zeros((C_out,), jnp.float32)
    b2d = bias.astype(jnp.float32).reshape(C_out, 1)

    if stride == 1:
        n_taps, shift, c_r = K, dilation, C_in
        halo = (K - 1) * dilation
        w_arr = jnp.transpose(weight, (2, 0, 1)).astype(act_dt)    # [K, C_out, C_in]
    else:
        n_taps, shift, c_r = 1, 0, C_in * K
        halo = 0
        w_arr = weight.reshape(1, C_out, C_in * K).astype(act_dt)  # [1, C_out, CK]

    t_l = _pick_lane_tile(L_out, c_r, C_out, halo)
    n_l = int(pl.cdiv(L_out, t_l))
    l_p = n_l * t_l
    win = t_l + halo

    if stride == 1:
        # Halo'd overlap windows: the kernel reads the signal once (+ tiny halo).
        rpad = l_p + halo - padding - L                 # >= padding >= 0
        x_pad = jnp.pad(signal, ((0, 0), (0, 0), (padding, rpad))).astype(act_dt)
        if n_l == 1:
            frames = x_pad                              # [B, C_in, win]
        else:
            frames = jnp.stack(
                [x_pad[:, :, l * t_l:l * t_l + win] for l in range(n_l)],
                axis=1).reshape(B * n_l, C_in, win)     # [B*n_l, C_in, win]
    else:
        # TODO(synk): stride > 1 keeps the im2col fallback (taps folded into the
        # channel axis); a halo'd strided in-kernel gather is left for later.
        x_pad = jnp.pad(signal, ((0, 0), (0, 0), (padding, padding)))
        taps = [x_pad[:, :, k * dilation:
                      k * dilation + (L_out - 1) * stride + 1: stride]
                for k in range(K)]
        xcol = jnp.stack(taps, axis=2).reshape(B, c_r, L_out)
        if l_p != L_out:
            xcol = jnp.pad(xcol, ((0, 0), (0, 0), (0, l_p - L_out)))
        frames = xcol.astype(act_dt)                    # [B, CK, l_p]

    if n_l == 1:
        # Pack several batch rows per grid step (fewer, fatter steps).
        n_b = 1
        for cand in (8, 4, 2):
            if B % cand == 0:
                n_b = cand
                break
        grid = (B // n_b,)
        x_spec = pl.BlockSpec((n_b, c_r, win), lambda g: (g, 0, 0))
        o_spec = pl.BlockSpec((n_b, C_out, t_l), lambda g: (g, 0, 0))
    else:
        n_b = 1
        grid = (B * n_l,)                               # flat axis -> even TC split
        if stride == 1:
            x_spec = pl.BlockSpec((1, c_r, win), lambda s: (s, 0, 0))
        else:
            x_spec = pl.BlockSpec((1, c_r, t_l),
                                  lambda s: (s // n_l, 0, s % n_l))
        o_spec = pl.BlockSpec((1, C_out, t_l),
                              lambda s: (s // n_l, 0, s % n_l))

    kernel = functools.partial(_conv_taps_kernel, n_taps=n_taps, shift=shift,
                               t_l=t_l, n_b=n_b)
    out = pl.pallas_call(
        kernel,
        out_shape=jax.ShapeDtypeStruct((B, C_out, l_p), out_dt),
        grid_spec=pltpu.PrefetchScalarGridSpec(
            num_scalar_prefetch=0,
            grid=grid,
            in_specs=[
                x_spec,
                pl.BlockSpec((n_taps, C_out, c_r), lambda s: (0, 0, 0)),  # resident
                pl.BlockSpec((C_out, 1), lambda s: (0, 0)),               # resident
            ],
            out_specs=o_spec,
        ),
        compiler_params=pltpu.CompilerParams(
            dimension_semantics=("parallel",)),
    )(frames, w_arr, b2d)

    return out[:, :, :L_out] if l_p != L_out else out


def _make_convnorm_params(key, c_in, c_out, k, gain=1.0):
    """Xavier-uniform weight (as ConvNorm.__init__) + default Conv1d bias init."""
    kw, kb = jax.random.split(key)
    fan_in, fan_out = c_in * k, c_out * k
    w_bound = gain * math.sqrt(6.0 / (fan_in + fan_out))
    w = jax.random.uniform(kw, (c_out, c_in, k), jnp.float32, -w_bound, w_bound)
    b_bound = 1.0 / math.sqrt(fan_in)
    b = jax.random.uniform(kb, (c_out,), jnp.float32, -b_bound, b_bound)
    return w, b


if __name__ == "__main__":
    key = jax.random.PRNGKey(0)

    configs = [
        # (B, C_in, C_out, L,    K, stride, dilation)
        (2, 8, 16, 64, 3, 1, 1),      # typical ConvNorm(kernel_size=3), short seq
        (2, 4, 8, 33, 1, 1, 1),       # default kernel_size=1 (pointwise)
        (2, 16, 16, 1200, 5, 1, 1),   # long sequence -> multi lane-tile path
        (1, 8, 8, 40, 5, 2, 2),       # strided + dilated -> im2col fallback
    ]

    for idx, (B, Ci, Co, L, K, st, dil) in enumerate(configs):
        key, k_sig, k_par = jax.random.split(key, 3)
        signal = jax.random.normal(k_sig, (B, Ci, L), dtype=jnp.float32)
        w, b = _make_convnorm_params(k_par, Ci, Co, K)

        out = jax.block_until_ready(
            conv_norm_forward(signal, w, b, stride=st, dilation=dil))

        # Reference on the same bf16-rounded operands: the kernel's bf16 MXU
        # products are exact and accumulation is f32, so tolerance can be tight.
        pad = int(dil * (K - 1) / 2)
        sig_q = signal.astype(jnp.bfloat16).astype(jnp.float32)
        w_q = w.astype(jnp.bfloat16).astype(jnp.float32)
        ref = lax.conv_general_dilated(
            sig_q, w_q,
            window_strides=(st,),
            padding=[(pad, pad)],
            rhs_dilation=(dil,),
            dimension_numbers=("NCH", "OIH", "NCH"),
            precision=lax.Precision.HIGHEST,
        ) + b[None, :, None]

        assert out.shape == ref.shape, (out.shape, ref.shape)
        max_err = float(jnp.max(jnp.abs(out.astype(jnp.float32) - ref)))
        if max_err > 1e-3:
            raise AssertionError(
                f"config {idx} {(B, Ci, Co, L, K, st, dil)}: "
                f"Pallas kernel mismatch vs reference, max err {max_err}")

    print("KERNEL_OK")
</pallas_src>

<mosaic_0001>
module attributes {stable_mosaic.version = 11 : i64} {
  func.func @_conv_taps_kernel(%arg0: i32, %arg1: memref<2x8x130xbf16, #tpu.memory_space<vmem>>, %arg2: memref<3x16x8xbf16, #tpu.memory_space<vmem>>, %arg3: memref<16x1xf32, #tpu.memory_space<vmem>>, %arg4: memref<2x16x128xf32, #tpu.memory_space<vmem>>) attributes {dimension_semantics = [#tpu.dimension_semantics<parallel>], iteration_bounds = array<i64: 1>, scalar_prefetch = 0 : i64, scratch_operands = 0 : i64, tpu.core_type = #tpu.core_type<tc>, window_params = [{transform_indices = @transform_0, window_bounds = array<i64: 2, 8, 130>}, {pipeline_mode = #tpu.pipeline_mode<synchronous>, transform_indices = @transform_1, window_bounds = array<i64: 3, 16, 8>}, {pipeline_mode = #tpu.pipeline_mode<synchronous>, transform_indices = @transform_2, window_bounds = array<i64: 16, 1>}, {transform_indices = @transform_3, window_bounds = array<i64: 2, 16, 128>}]} {
    %c0 = arith.constant 0 : index
    %c0_0 = arith.constant 0 : index
    %0 = vector.load %arg3[%c0, %c0_0] : memref<16x1xf32, #tpu.memory_space<vmem>>, vector<16x1xf32>
    %c0_1 = arith.constant 0 : index
    %c0_2 = arith.constant 0 : index
    %c0_3 = arith.constant 0 : index
    %1 = vector.load %arg1[%c0_1, %c0_2, %c0_3] : memref<2x8x130xbf16, #tpu.memory_space<vmem>>, vector<1x8x130xbf16>
    %2 = vector.shape_cast %1 : vector<1x8x130xbf16> to vector<8x130xbf16>
    %c0_4 = arith.constant 0 : index
    %c0_5 = arith.constant 0 : index
    %c0_6 = arith.constant 0 : index
    %3 = vector.load %arg2[%c0_4, %c0_5, %c0_6] : memref<3x16x8xbf16, #tpu.memory_space<vmem>>, vector<1x16x8xbf16>
    %4 = vector.shape_cast %3 : vector<1x16x8xbf16> to vector<16x8xbf16>
    %5 = vector.extract_strided_slice %2 {offsets = [0, 0], sizes = [8, 128], strides = [1, 1]} : vector<8x130xbf16> to vector<8x128xbf16>
    %cst = arith.constant dense<0.000000e+00> : vector<16x128xf32>
    %6 = tpu.matmul %4, %5, %cst {dimension_numbers = #tpu.dot_dimension_numbers<[1], [0], [0], [1], [0, 0, 1, 1], [], []>} : vector<16x8xbf16>, vector<8x128xbf16>, vector<16x128xf32> -> vector<16x128xf32>
    %c1 = arith.constant 1 : index
    %c0_7 = arith.constant 0 : index
    %c0_8 = arith.constant 0 : index
    %7 = vector.load %arg2[%c1, %c0_7, %c0_8] : memref<3x16x8xbf16, #tpu.memory_space<vmem>>, vector<1x16x8xbf16>
    %8 = vector.shape_cast %7 : vector<1x16x8xbf16> to vector<16x8xbf16>
    %9 = vector.extract_strided_slice %2 {offsets = [0, 1], sizes = [8, 128], strides = [1, 1]} : vector<8x130xbf16> to vector<8x128xbf16>
    %cst_9 = arith.constant dense<0.000000e+00> : vector<16x128xf32>
    %10 = tpu.matmul %8, %9, %cst_9 {dimension_numbers = #tpu.dot_dimension_numbers<[1], [0], [0], [1], [0, 0, 1, 1], [], []>} : vector<16x8xbf16>, vector<8x128xbf16>, vector<16x128xf32> -> vector<16x128xf32>
    %11 = arith.addf %6, %10 : vector<16x128xf32>
    %c2 = arith.constant 2 : index
    %c0_10 = arith.constant 0 : index
    %c0_11 = arith.constant 0 : index
    %12 = vector.load %arg2[%c2, %c0_10, %c0_11] : memref<3x16x8xbf16, #tpu.memory_space<vmem>>, vector<1x16x8xbf16>
    %13 = vector.shape_cast %12 : vector<1x16x8xbf16> to vector<16x8xbf16>
    %14 = vector.extract_strided_slice %2 {offsets = [0, 2], sizes = [8, 128], strides = [1, 1]} : vector<8x130xbf16> to vector<8x128xbf16>
    %cst_12 = arith.constant dense<0.000000e+00> : vector<16x128xf32>
    %15 = tpu.matmul %13, %14, %cst_12 {dimension_numbers = #tpu.dot_dimension_numbers<[1], [0], [0], [1], [0, 0, 1, 1], [], []>} : vector<16x8xbf16>, vector<8x128xbf16>, vector<16x128xf32> -> vector<16x128xf32>
    %16 = arith.addf %11, %15 : vector<16x128xf32>
    %17 = vector.broadcast %0 : vector<16x1xf32> to vector<16x128xf32>
    %18 = arith.addf %16, %17 : vector<16x128xf32>
    %c0_13 = arith.constant 0 : index
    %c0_14 = arith.constant 0 : index
    %c0_15 = arith.constant 0 : index
    %19 = vector.load %arg4[%c0_13, %c0_14, %c0_15] : memref<2x16x128xf32, #tpu.memory_space<vmem>>, vector<1x16x128xf32>
    %20 = vector.shape_cast %19 : vector<1x16x128xf32> to vector<16x128xf32>
    %21 = vector.shape_cast %18 : vector<16x128xf32> to vector<1x16x128xf32>
    tpu.vector_store %arg4[%c0_13, %c0_14, %c0_15], %21 {strides = array<i32>} : memref<2x16x128xf32, #tpu.memory_space<vmem>>, vector<1x16x128xf32>,
    %c1_16 = arith.constant 1 : index
    %c0_17 = arith.constant 0 : index
    %c0_18 = arith.constant 0 : index
    %22 = vector.load %arg1[%c1_16, %c0_17, %c0_18] : memref<2x8x130xbf16, #tpu.memory_space<vmem>>, vector<1x8x130xbf16>
    %23 = vector.shape_cast %22 : vector<1x8x130xbf16> to vector<8x130xbf16>
    %c0_19 = arith.constant 0 : index
    %c0_20 = arith.constant 0 : index
    %c0_21 = arith.constant 0 : index
    %24 = vector.load %arg2[%c0_19, %c0_20, %c0_21] : memref<3x16x8xbf16, #tpu.memory_space<vmem>>, vector<1x16x8xbf16>
    %25 = vector.shape_cast %24 : vector<1x16x8xbf16> to vector<16x8xbf16>
    %26 = vector.extract_strided_slice %23 {offsets = [0, 0], sizes = [8, 128], strides = [1, 1]} : vector<8x130xbf16> to vector<8x128xbf16>
    %cst_22 = arith.constant dense<0.000000e+00> : vector<16x128xf32>
    %27 = tpu.matmul %25, %26, %cst_22 {dimension_numbers = #tpu.dot_dimension_numbers<[1], [0], [0], [1], [0, 0, 1, 1], [], []>} : vector<16x8xbf16>, vector<8x128xbf16>, vector<16x128xf32> -> vector<16x128xf32>
    %c1_23 = arith.constant 1 : index
    %c0_24 = arith.constant 0 : index
    %c0_25 = arith.constant 0 : index
    %28 = vector.load %arg2[%c1_23, %c0_24, %c0_25] : memref<3x16x8xbf16, #tpu.memory_space<vmem>>, vector<1x16x8xbf16>
    %29 = vector.shape_cast %28 : vector<1x16x8xbf16> to vector<16x8xbf16>
    %30 = vector.extract_strided_slice %23 {offsets = [0, 1], sizes = [8, 128], strides = [1, 1]} : vector<8x130xbf16> to vector<8x128xbf16>
    %cst_26 = arith.constant dense<0.000000e+00> : vector<16x128xf32>
    %31 = tpu.matmul %29, %30, %cst_26 {dimension_numbers = #tpu.dot_dimension_numbers<[1], [0], [0], [1], [0, 0, 1, 1], [], []>} : vector<16x8xbf16>, vector<8x128xbf16>, vector<16x128xf32> -> vector<16x128xf32>
    %32 = arith.addf %27, %31 : vector<16x128xf32>
    %c2_27 = arith.constant 2 : index
    %c0_28 = arith.constant 0 : index
    %c0_29 = arith.constant 0 : index
    %33 = vector.load %arg2[%c2_27, %c0_28, %c0_29] : memref<3x16x8xbf16, #tpu.memory_space<vmem>>, vector<1x16x8xbf16>
    %34 = vector.shape_cast %33 : vector<1x16x8xbf16> to vector<16x8xbf16>
    %35 = vector.extract_strided_slice %23 {offsets = [0, 2], sizes = [8, 128], strides = [1, 1]} : vector<8x130xbf16> to vector<8x128xbf16>
    %cst_30 = arith.constant dense<0.000000e+00> : vector<16x128xf32>
    %36 = tpu.matmul %34, %35, %cst_30 {dimension_numbers = #tpu.dot_dimension_numbers<[1], [0], [0], [1], [0, 0, 1, 1], [], []>} : vector<16x8xbf16>, vector<8x128xbf16>, vector<16x128xf32> -> vector<16x128xf32>
    %37 = arith.addf %32, %36 : vector<16x128xf32>
    %38 = vector.broadcast %0 : vector<16x1xf32> to vector<16x128xf32>
    %39 = arith.addf %37, %38 : vector<16x128xf32>
    %c1_31 = arith.constant 1 : index
    %c0_32 = arith.constant 0 : index
    %c0_33 = arith.constant 0 : index
    %40 = vector.load %arg4[%c1_31, %c0_32, %c0_33] : memref<2x16x128xf32, #tpu.memory_space<vmem>>, vector<1x16x128xf32>
    %41 = vector.shape_cast %40 : vector<1x16x128xf32> to vector<16x128xf32>
    %42 = vector.shape_cast %39 : vector<16x128xf32> to vector<1x16x128xf32>
    tpu.vector_store %arg4[%c1_31, %c0_32, %c0_33], %42 {strides = array<i32>} : memref<2x16x128xf32, #tpu.memory_space<vmem>>, vector<1x16x128xf32>,
    return
  }
  func.func @transform_0(%arg0: i32) -> (i32, i32, i32) {
    %c0_i32 = arith.constant 0 : i32
    %c0_i32_0 = arith.constant 0 : i32
    %c0_i32_1 = arith.constant 0 : i32
    return %arg0, %c0_i32, %c0_i32_0 : i32, i32, i32
  }
  func.func @transform_1(%arg0: i32) -> (i32, i32, i32) {
    %c0_i32 = arith.constant 0 : i32
    %c0_i32_0 = arith.constant 0 : i32
    %c0_i32_1 = arith.constant 0 : i32
    %c0_i32_2 = arith.constant 0 : i32
    return %c0_i32, %c0_i32_0, %c0_i32_1 : i32, i32, i32
  }
  func.func @transform_2(%arg0: i32) -> (i32, i32) {
    %c0_i32 = arith.constant 0 : i32
    %c0_i32_0 = arith.constant 0 : i32
    %c0_i32_1 = arith.constant 0 : i32
    return %c0_i32, %c0_i32_0 : i32, i32
  }
  func.func @transform_3(%arg0: i32) -> (i32, i32, i32) {
    %c0_i32 = arith.constant 0 : i32
    %c0_i32_0 = arith.constant 0 : i32
    %c0_i32_1 = arith.constant 0 : i32
    return %arg0, %c0_i32, %c0_i32_0 : i32, i32, i32
  }
}

</mosaic_0001>

<bundles_post_ra>
// kernel: tpu_custom_call.1
= control target key start
LH: loop header
LB: loop body
LE: loop exit
PB: predicated region body
PF: predicated region fallthrough
CT: control target
= control target key end

     0   :  { %vm44_vm0 = vcmask 1043456   ;;  %s537_s14 = smov 126   ;;  %s538_s15 = smov 127   ;;  %v539_v5 = vmov 0.0   ;;  %vm540_vm1 = vmmov 0   ;;  %vm40_vm2 = vcmask 64512   ;;  %s639_s0 = inlined_call_operand.vmem [shape: bf16[2,8,130], index: 0, kind: input, shape index: {}]   ;;  %s640_s1 = inlined_call_operand.vmem [shape: bf16[3,16,8], index: 1, kind: input, shape index: {}]   ;;  %s641_s2 = inlined_call_operand.vmem [shape: f32[16,1], index: 2, kind: input, shape index: {}]   ;;  %s642_s3 = inlined_call_operand.hbm [shape: f32[2,16,128], index: 3, kind: output, shape index: {}]  }
   0x1   :  { %v18_v0 = vld [vmem:[%s639_s0] sm:$0xff]  ;;  %v432_v4 = vld [vmem:[%s639_s0 + $0x8] sm:$0xff]  ;;  %457 = vmatprep.subr.bf16.mxu0 %v539_v5  ;;  %463 = vmatprep.subr.bf16.mxu1 %v539_v5 }
   0x2   :  { %v423_v1 = vcombine.low %v18_v0, %v18_v0  ;;  %v98_v2 = vsel %vm44_vm0, %v18_v0, 0  ;;  %v424_v3 = vcombine.high %v18_v0, %v18_v0  ;;  %v507_v6 = vld [vmem:[%s640_s1] sm:$0xff]   ;;  %459 = vmatprep.mubr.msk.bf16.mxu0 %vm540_vm1, %v539_v5  ;;  %465 = vmatprep.mubr.msk.bf16.mxu1 %vm540_vm1, %v539_v5  ;;  %v437_v7 = vcombine.high %v432_v4, %v432_v4 }
   0x3   :  { %464 = vmatpush3.bf16.msra.mxu1 %v98_v2  ;;  %v436_v8 = vcombine.low %v432_v4, %v432_v4 }
   0x4   :  { %149 = vrot.lane.b32.xlu1 %v423_v1, %s537_s14  ;;  %34 = vrot.lane.b32.xlu0 %v423_v1, %s538_s15 }
   0x5   :  { %475 = vmatprep.subr.bf16.mxu1 %v539_v5 }
   0x8   :  { %151 = vrot.lane.b32.xlu1 %v424_v3, %s537_s14  ;;  %36 = vrot.lane.b32.xlu0 %v424_v3, %s538_s15 }
   0x9   :  { %8 = vsyncpa [#allocation3], 0  ;;  %466 = vmatmul.mubr.msk.bf16.vlgmr.msra.gmra.mrb[0].mxu1 %vm40_vm2, %v507_v6  ;;  %v541_v9 = vmov 0   ;;  %v16_v10 = vld [vmem:[%s641_s2] sm:$0xff]  ;;  %v17_v11 = vld [vmem:[%s641_s2 + $0x8] sm:$0xff]  ;;  %vm38_vm3 = vcmask 1039360  }
   0xa   :  { %477 = vmatprep.mubr.msk.bf16.mxu1 %vm540_vm1, %v539_v5  ;;  %501 = vset.pattern.permute.xlu0 %v541_v9  ;;  %vm153_vm4 = vcmask 1031168   ;;  %v508_v18 = vld [vmem:[%s640_s1 + $0x8] sm:$0xff]   ;;  %v509_v29 = vld [vmem:[%s640_s1 + $0x10] sm:$0xff]   ;;  %v295_v31 = vsel %vm44_vm0, %v432_v4, 0  ;;  %v511_v33 = vld [vmem:[%s640_s1] sm:$0xff]  }
   0xb   :  { %502 = vset.pattern.permute.xlu1 %v541_v9  ;;  %v510_v25 = vld [vmem:[%s640_s1 + $0x8] sm:$0xff]   ;;  %v512_v32 = vld [vmem:[%s640_s1 + $0x10] sm:$0xff]   ;;  %s542_s1 = smov [#allocation2]  }
   0xc   :  { %236 = vrot.lane.b32.xlu1 %v437_v7, %s538_s15  ;;  %234 = vrot.lane.b32.xlu0 %v436_v8, %s538_s15  ;;  %s409_s5 = sshll.u32 %s542_s1, 4  ;;  %s410_s5 = int_to_ptr.vmem [resolvable:$true] %s409_s5 }
   0xd   :  { %s513_s6 = scalar_lea.vmem %s410_s5, 512  ;;  %p518_p1 = scmp.lt.s32.totalorder %s410_s5, %s410_s5 }
   0xe   :  { %p514_p0 = scmp.ne.s32.totalorder %s410_s5, %s513_s6  ;;  %p519_p2 = scmp.lt.s32.totalorder %s513_s6, %s513_s6 }
  0x10   :  { %347 = vrot.lane.b32.xlu1 %v437_v7, %s537_s14  ;;  %345 = vrot.lane.b32.xlu0 %v436_v8, %s537_s14  ;;  %p520_p3 = por %p519_p2, %p518_p1 }
  0x12   :  { %p521_p4 = pnand %p520_p3, %p514_p0 }
  0x14   :  { %206 = vperm.xlu0 %501, %v16_v10   ;;  %211 = vperm.xlu1 %502, %v17_v11  }
  0x76   :  { %v150_v12 = vpop.permute.xlu1 %149  ;;  %v35_v13 = vpop.permute.xlu0 %34 }
  0x7a   :  { %v152_v14 = vpop.permute.xlu1 %151  ;;  %v37_v15 = vpop.permute.xlu0 %36 }
  0x7b   :  { %v39_v16 = vsel %vm38_vm3, %v35_v13, %v37_v15  ;;  %v154_v19 = vsel %vm153_vm4, %v150_v12, %v152_v14 }
  0x7c   :  { %v46_v17 = vsel %vm44_vm0, %v39_v16, 0  ;;  %v159_v23 = vsel %vm44_vm0, %v154_v19, 0 }
  0x7d   :  { %458 = vmatpush3.bf16.msra.mxu0 %v46_v17 }
  0x7e   :  { %v237_v20 = vpop.permute.xlu1 %236  ;;  %469 = vmatprep.subr.bf16.mxu0 %v539_v5  ;;  %v235_v21 = vpop.permute.xlu0 %234 }
  0x7f   :  { %v238_v22 = vsel %vm38_vm3, %v235_v21, %v237_v20 }
  0x80   :  { %460 = vmatmul.mubr.msk.bf16.vlgmr.msra.gmra.mrb[0].mxu0 %vm40_vm2, %v508_v18  ;;  %v243_v24 = vsel %vm44_vm0, %v238_v22, 0 }
  0x81   :  { %470 = vmatpush3.bf16.msra.mxu0 %v159_v23  ;;  %476 = vmatpush3.bf16.msra.mxu1 %v243_v24 }
  0x82   :  { %471 = vmatprep.mubr.msk.bf16.mxu0 %vm540_vm1, %v539_v5  ;;  %v348_v26 = vpop.permute.xlu1 %347  ;;  %481 = vmatprep.subr.bf16.mxu0 %v539_v5  ;;  %v346_v27 = vpop.permute.xlu0 %345 }
  0x83   :  { %v349_v28 = vsel %vm153_vm4, %v346_v27, %v348_v26  ;;  %487 = vmatprep.subr.bf16.mxu1 %v539_v5 }
  0x84   :  { %478 = vmatmul.mubr.msk.bf16.vlgmr.msra.gmra.mrb[4].mxu1 %vm40_vm2, %v510_v25  ;;  %v354_v30 = vsel %vm44_vm0, %v349_v28, 0 }
  0x85   :  { %488 = vmatpush3.bf16.msra.mxu1 %v354_v30  ;;  %489 = vmatprep.mubr.msk.bf16.mxu1 %vm540_vm1, %v539_v5 }
  0x88   :  { %472 = vmatmul.mubr.msk.bf16.vlgmr.msra.gmra.mrb[4].mxu0 %vm40_vm2, %v509_v29 }
  0x89   :  { %482 = vmatpush3.bf16.msra.mxu0 %v295_v31  ;;  %483 = vmatprep.mubr.msk.bf16.mxu0 %vm540_vm1, %v539_v5 }
  0x8c   :  { %490 = vmatmul.mubr.msk.bf16.vlgmr.msra.gmra.mrb[8].mxu1 %vm40_vm2, %v512_v32 }
  0x90   :  { %484 = vmatmul.mubr.msk.bf16.vlgmr.msra.gmra.mrb[8].mxu0 %vm40_vm2, %v511_v33 }
  0x93   :  { %v207_v49 = vpop.permute.xlu0 %206  ;;  %v212_v53 = vpop.permute.xlu1 %211 }
  0xdc   :  { %v134_v34 = vpop.f32.mrb[0].mxu1 }
  0xdd   :  { %v467_v35 = vpop.f32.mrb[1].mxu1 }
  0xde   :  { %v137_v36 = vpop.f32.mrb[2].mxu1 }
  0xdf   :  { %v468_v37 = vpop.f32.mrb[3].mxu1 }
 0x153   :  { %v82_v38 = vpop.f32.mrb[0].mxu0 }
 0x154   :  { %v135_v39 = vadd.f32 %v134_v34, %v82_v38  ;;  %v461_v40 = vpop.f32.mrb[1].mxu0 }
 0x155   :  { %v85_v41 = vpop.f32.mrb[2].mxu0 }
 0x156   :  { %v138_v42 = vadd.f32 %v137_v36, %v85_v41  ;;  %v462_v43 = vpop.f32.mrb[3].mxu0 }
 0x157   :  { %v279_v44 = vpop.f32.mrb[4].mxu1 }
 0x158   :  { %v479_v45 = vpop.f32.mrb[5].mxu1 }
 0x159   :  { %v282_v46 = vpop.f32.mrb[6].mxu1 }
 0x15a   :  { %v480_v47 = vpop.f32.mrb[7].mxu1 }
 0x15b   :  { %v195_v48 = vpop.f32.mrb[4].mxu0 }
 0x15c   :  { %v202_v50 = vadd.f32 %v195_v48, %v135_v39  ;;  %v473_v51 = vpop.f32.mrb[5].mxu0 }
 0x15d   :  { %v198_v52 = vpop.f32.mrb[6].mxu0 }
 0x15e   :  { %v203_v54 = vadd.f32 %v198_v52, %v138_v42  ;;  %v214_v55 = vadd.f32 %v207_v49, %v202_v50  ;;  %v474_v56 = vpop.f32.mrb[7].mxu0 }
 0x15f   :  { %v390_v57 = vpop.f32.mrb[8].mxu1 }
 0x160   :  { %216 = vst [vmem:[#allocation2] sm:$0xff] %v214_v55  ;;  %v215_v58 = vadd.f32 %v212_v53, %v203_v54  ;;  %v491_v59 = vpop.f32.mrb[9].mxu1 }
 0x161   :  { %v393_v60 = vpop.f32.mrb[10].mxu1 }
 0x162   :  { %217 = vst [vmem:[#allocation2 + $0x8] sm:$0xff] %v215_v58  ;;  %v492_v61 = vpop.f32.mrb[11].mxu1 }
 0x163   :  { %v331_v62 = vpop.f32.mrb[8].mxu0 }
 0x164   :  { %v332_v63 = vadd.f32 %v331_v62, %v279_v44  ;;  %v485_v0 = vpop.f32.mrb[9].mxu0 }
 0x165   :  { %v334_v1 = vpop.f32.mrb[10].mxu0 }
 0x166   :  { %v397_v2 = vadd.f32 %v390_v57, %v332_v63  ;;  %v335_v3 = vadd.f32 %v334_v1, %v282_v46  ;;  %v486_v4 = vpop.f32.mrb[11].mxu0 }
 0x168   :  { %v399_v5 = vadd.f32 %v397_v2, %v207_v49  ;;  %v398_v6 = vadd.f32 %v393_v60, %v335_v3 }
 0x16a   :  { %402 = vst [vmem:[#allocation2 + $0x10] sm:$0xff] %v399_v5  ;;  %v400_v7 = vadd.f32 %v398_v6, %v212_v53 }
 0x16c   :  { %403 = vst [vmem:[#allocation2 + $0x18] sm:$0xff] %v400_v7 }
 0x16d   :  { %524 = shalt.err (!%p521_p4)
}
 0x16e   :  { %s525_s9 = scalar_lea.hbm %s642_s3, 512 }
 0x16f   :  { %p526_p5 = scmp.ne.s32.totalorder %s642_s3, %s525_s9  ;;  %p529_p6 = scmp.lt.u32.totalorder %s525_s9, %s642_s3 }
 0x171   :  { %p531_p7 = pnand %p529_p6, %p526_p5 }
 0x173   :  { %534 = shalt.err (!%p531_p7)
}
 0x174   :  { %s543_s14 = smov 128   ;;  %s544_s15 = smov 8  }
 0x175   :  { %415 = dma.vmem_to_hbm [thread:$0]  %s410_s5, 512, %s642_s3, [#allocation3], %s543_s14, %s543_s14, %s544_s15  }
 0x176   :  { %535 = dma.done.wait [#allocation3], 512  }
 0x177   :  { %536 = vsyncadd [#allocation3], 4294966784 }
 0x178   :  { %419 = vsyncpa [#allocation3], 1 }

</bundles_post_ra>
